<compile_context>
chip_gen: v5e
topology: v5e:2x2
jax: 0.10.0
libtpu: 0.0.40
codegen_flags: <defaults>
</compile_context>

<pallas_src>
import functools

import jax
import jax.numpy as jnp
from jax.experimental import pallas as pl
from jax.experimental.pallas import tpu as pltpu


def _round_up(x, m):
    return ((x + m - 1) // m) * m


def _cdiv(a, b):
    return (a + b - 1) // b


def _patch_embed_kernel(x_ref, w_ref, p_ref, o_ref, *, eps):
    # x_ref: (tm, Kp) stream dtype; w_ref: (Kp, E) stream dtype;
    # p_ref: (3, E) f32 rows = [conv bias, ln gamma, ln beta]; o_ref: (tm, E).
    y = jnp.dot(x_ref[...], w_ref[...], preferred_element_type=jnp.float32)
    p = p_ref[...]
    y = y + p[0:1, :]

    # LayerNorm over the (never-padded) embedding dim.  Padded K columns of
    # patches/weight are zero so y is exact; plain row reductions over E give
    # exact statistics — no masking needed.
    inv_e = jnp.float32(1.0 / y.shape[-1])
    mean = jnp.sum(y, axis=-1, keepdims=True) * inv_e
    diff = y - mean
    var = jnp.sum(diff * diff, axis=-1, keepdims=True) * inv_e
    y_hat = diff * jax.lax.rsqrt(var + eps)
    o_ref[...] = (y_hat * p[1:2, :] + p[2:3, :]).astype(o_ref.dtype)


def patch_embed_forward(x, conv_w, conv_b, ln_gamma, ln_beta,
                        patch_size=(4, 4), eps=1e-5,
                        stream_dtype=jnp.bfloat16, out_dtype=None, tm=None):
    """x: (B, C, H, W); conv_w: (E, C, ph, pw); conv_b/ln_*: (E,)."""
    B, C, H, W = x.shape
    ph, pw = patch_size
    Hp, Wp = H // ph, W // pw
    E = conv_w.shape[0]
    K = C * ph * pw
    M = B * Hp * Wp

    stream_dtype = jnp.dtype(stream_dtype)
    out_dtype = jnp.dtype(x.dtype if out_dtype is None else out_dtype)
    in_item = stream_dtype.itemsize
    out_item = out_dtype.itemsize
    sublane = max(8, 32 // in_item)          # 8 for f32, 16 for bf16, 32 for int8
    Kp = _round_up(K, 128)                   # lane-dense contracted dim

    # Chip-gated VMEM budgets: v5e/v6e have 128 MiB physical VMEM, v7x 64 MiB.
    try:
        phys_vmem = pltpu.get_tpu_info().vmem_capacity_bytes
    except Exception:
        phys_vmem = 64 << 20                 # be conservative (assume v7x-like)
    big_vmem = phys_vmem >= (100 << 20)
    vmem_limit = (64 << 20) if big_vmem else (48 << 20)

    if tm is None:
        budget = (40 << 20) if big_vmem else (24 << 20)
        hard_cap = 1024 if big_vmem else 512
        # Single-buffered weight + params, double-buffered in/out tiles, plus
        # ~3 f32 LN intermediates (y / diff / y_hat) per row of compiler temps.
        fixed = Kp * E * in_item + 3 * E * 4
        per_row = 2 * Kp * in_item + 2 * E * out_item + 3 * E * 4
        # (If fixed exceeds the budget this falls back to tm=sublane: correct
        # but slow — only hit for absurdly large E*K.)
        tm = max((budget - fixed) // max(per_row, 1), sublane)
        tm = min(tm, hard_cap)
        # Keep >= ~8 grid steps (>= 4 pipelined iterations per v7x core), but
        # never shrink below 256 rows just to manufacture steps.
        tm = min(tm, max(256, _round_up(_cdiv(M, 8), sublane)))
        tm = min(tm, _round_up(M, sublane))
        tm = max(sublane, (tm // sublane) * sublane)
        # Prefer a divisor of M within ~10% of the budgeted tile so Mp == M
        # and the epilogue slice (an extra HBM pass) disappears.
        best = 0
        d = sublane
        lim = min(tm, M)
        while d <= lim:
            if M % d == 0:
                best = d
            d += sublane
        if best >= max(sublane, int(0.9 * tm)):
            tm = best

    Mp = _round_up(M, tm)
    grid = (Mp // tm,)

    # Patchify (glue in plain JAX): (B,C,H,W) -> (B,Hp,Wp,C,ph,pw) -> (M,K),
    # K ordered (c, kh, kw) to match nn.Conv2d's weight flattening.
    # TODO(synk): fusing the im2col into the kernel (reshape-only BlockSpec +
    # in-VMEM rearrange on the XLU) would remove one HBM read+write of x.
    patches = x.reshape(B, C, Hp, ph, Wp, pw)
    patches = patches.transpose(0, 2, 4, 1, 3, 5).reshape(M, K)
    patches = patches.astype(stream_dtype)
    if Mp != M or Kp != K:
        patches = jnp.pad(patches, ((0, Mp - M), (0, Kp - K)))

    w_mat = conv_w.reshape(E, K).T.astype(stream_dtype)
    if Kp != K:
        w_mat = jnp.pad(w_mat, ((0, Kp - K), (0, 0)))
    params = jnp.stack([conv_b, ln_gamma, ln_beta]).astype(jnp.float32)  # (3,E)

    kernel = functools.partial(_patch_embed_kernel, eps=eps)

    def call(const_pipeline_mode):
        const_kw = ({} if const_pipeline_mode is None
                    else dict(pipeline_mode=const_pipeline_mode))
        return pl.pallas_call(
            kernel,
            out_shape=jax.ShapeDtypeStruct((Mp, E), out_dtype),
            grid_spec=pltpu.PrefetchScalarGridSpec(
                num_scalar_prefetch=0,
                grid=grid,
                in_specs=[
                    pl.BlockSpec((tm, Kp), lambda i: (i, 0)),              # patches
                    pl.BlockSpec((Kp, E), lambda i: (0, 0), **const_kw),   # weight
                    pl.BlockSpec((3, E), lambda i: (0, 0), **const_kw),    # b/g/beta
                ],
                out_specs=pl.BlockSpec((tm, E), lambda i: (i, 0)),
            ),
            compiler_params=pltpu.CompilerParams(
                dimension_semantics=("parallel",),
                vmem_limit_bytes=vmem_limit),
        )(patches, w_mat, params)

    try:
        # Constant-index operands fetched once (no double-buffer VMEM cost).
        out = call(pl.Buffered(1))
    except Exception:
        out = call(None)

    if Mp != M:
        out = out[:M]
    out = out.reshape(B, Hp * Wp, E)          # == flatten(2).transpose(1, 2)
    return out, Hp, Wp


def _reference(x, conv_w, conv_b, ln_gamma, ln_beta, patch_size, eps=1e-5):
    ph, pw = patch_size
    y = jax.lax.conv_general_dilated(
        x, conv_w, window_strides=(ph, pw), padding="VALID",
        dimension_numbers=("NCHW", "OIHW", "NCHW"))
    y = y + conv_b[None, :, None, None]
    B_, E, Hp, Wp = y.shape
    y = y.reshape(B_, E, Hp * Wp).transpose(0, 2, 1)
    mean = jnp.mean(y, axis=-1, keepdims=True)
    var = jnp.mean((y - mean) ** 2, axis=-1, keepdims=True)
    return (y - mean) / jnp.sqrt(var + eps) * ln_gamma + ln_beta


if __name__ == "__main__":
    # Small shapes consistent with the module: img 16x16, patch 4, C=4, E=32.
    B, C, H, W = 2, 4, 16, 16
    ph = pw = 4
    E = 32

    key = jax.random.PRNGKey(0)
    kx, kw = jax.random.split(key)
    x = jax.random.normal(kx, (B, C, H, W), dtype=jnp.float32)

    # PyTorch-style init: conv weight ~ N(0, sqrt(2/fan_out)), conv bias = 0,
    # LN gamma = 1, LN beta = 0.
    fan_out = ph * pw * E
    conv_w = jax.random.normal(kw, (E, C, ph, pw), dtype=jnp.float32) * jnp.sqrt(
        2.0 / fan_out)
    conv_b = jnp.zeros((E,), jnp.float32)
    ln_gamma = jnp.ones((E,), jnp.float32)
    ln_beta = jnp.zeros((E,), jnp.float32)

    # 1) Exact-precision path (f32 streaming) checked tightly vs the reference.
    out_f32, Hp, Wp = patch_embed_forward(
        x, conv_w, conv_b, ln_gamma, ln_beta, patch_size=(ph, pw),
        stream_dtype=jnp.float32)
    out_f32 = jax.block_until_ready(out_f32)
    ref = _reference(x, conv_w, conv_b, ln_gamma, ln_beta, (ph, pw))
    assert out_f32.shape == (B, (H // ph) * (W // pw), E)
    assert Hp == H // ph and Wp == W // pw
    assert jnp.allclose(out_f32, ref, atol=1e-4, rtol=1e-4)

    # 2) Fast path (default): bf16-streamed operands, f32 accumulation + LN,
    #    checked against the reference evaluated on bf16-rounded inputs.
    out_bf, _, _ = patch_embed_forward(
        x, conv_w, conv_b, ln_gamma, ln_beta, patch_size=(ph, pw))
    out_bf = jax.block_until_ready(out_bf)
    ref_bf = _reference(
        x.astype(jnp.bfloat16).astype(jnp.float32),
        conv_w.astype(jnp.bfloat16).astype(jnp.float32),
        conv_b, ln_gamma, ln_beta, (ph, pw))
    assert out_bf.shape == (B, (H // ph) * (W // pw), E)
    assert jnp.allclose(out_bf, ref_bf, atol=2e-2, rtol=2e-2)

    print("KERNEL_OK")
</pallas_src>

<mosaic_0001>
module attributes {stable_mosaic.version = 11 : i64} {
  func.func @_patch_embed_kernel(%arg0: i32, %arg1: memref<32x128xf32, #tpu.memory_space<vmem>>, %arg2: memref<128x32xf32, #tpu.memory_space<vmem>>, %arg3: memref<3x32xf32, #tpu.memory_space<vmem>>, %arg4: memref<32x32xf32, #tpu.memory_space<vmem>>) attributes {dimension_semantics = [#tpu.dimension_semantics<parallel>], iteration_bounds = array<i64: 1>, scalar_prefetch = 0 : i64, scratch_operands = 0 : i64, tpu.core_type = #tpu.core_type<tc>, window_params = [{transform_indices = @transform_0, window_bounds = array<i64: 32, 128>}, {pipeline_mode = #tpu.pipeline_mode<synchronous>, transform_indices = @transform_1, window_bounds = array<i64: 128, 32>}, {pipeline_mode = #tpu.pipeline_mode<synchronous>, transform_indices = @transform_2, window_bounds = array<i64: 3, 32>}, {transform_indices = @transform_3, window_bounds = array<i64: 32, 32>}]} {
    %c0 = arith.constant 0 : index
    %c0_0 = arith.constant 0 : index
    %0 = vector.load %arg1[%c0, %c0_0] : memref<32x128xf32, #tpu.memory_space<vmem>>, vector<32x128xf32>
    %c0_1 = arith.constant 0 : index
    %c0_2 = arith.constant 0 : index
    %1 = vector.load %arg2[%c0_1, %c0_2] : memref<128x32xf32, #tpu.memory_space<vmem>>, vector<128x32xf32>
    %cst = arith.constant dense<0.000000e+00> : vector<32x32xf32>
    %2 = tpu.matmul %0, %1, %cst {dimension_numbers = #tpu.dot_dimension_numbers<[1], [0], [0], [1], [0, 0, 1, 1], [], []>} : vector<32x128xf32>, vector<128x32xf32>, vector<32x32xf32> -> vector<32x32xf32>
    %c0_3 = arith.constant 0 : index
    %c0_4 = arith.constant 0 : index
    %3 = vector.load %arg3[%c0_3, %c0_4] : memref<3x32xf32, #tpu.memory_space<vmem>>, vector<3x32xf32>
    %4 = vector.extract_strided_slice %3 {offsets = [0, 0], sizes = [1, 32], strides = [1, 1]} : vector<3x32xf32> to vector<1x32xf32>
    %5 = vector.broadcast %4 : vector<1x32xf32> to vector<32x32xf32>
    %6 = arith.addf %2, %5 : vector<32x32xf32>
    %cst_5 = arith.constant dense<0.000000e+00> : vector<32xf32>
    %7 = vector.multi_reduction <add>, %6, %cst_5 [1] : vector<32x32xf32> to vector<32xf32>
    %8 = vector.shape_cast %7 : vector<32xf32> to vector<32x1xf32>
    %cst_6 = arith.constant 3.125000e-02 : f32
    %9 = vector.broadcast %cst_6 : f32 to vector<32x1xf32>
    %10 = arith.mulf %8, %9 : vector<32x1xf32>
    %11 = vector.broadcast %10 : vector<32x1xf32> to vector<32x32xf32>
    %12 = arith.subf %6, %11 : vector<32x32xf32>
    %13 = arith.mulf %12, %12 : vector<32x32xf32>
    %cst_7 = arith.constant dense<0.000000e+00> : vector<32xf32>
    %14 = vector.multi_reduction <add>, %13, %cst_7 [1] : vector<32x32xf32> to vector<32xf32>
    %15 = vector.shape_cast %14 : vector<32xf32> to vector<32x1xf32>
    %cst_8 = arith.constant 3.125000e-02 : f32
    %16 = vector.broadcast %cst_8 : f32 to vector<32x1xf32>
    %17 = arith.mulf %15, %16 : vector<32x1xf32>
    %cst_9 = arith.constant 9.99999974E-6 : f32
    %18 = vector.broadcast %cst_9 : f32 to vector<32x1xf32>
    %19 = arith.addf %17, %18 : vector<32x1xf32>
    %20 = math.rsqrt %19 : vector<32x1xf32>
    %21 = vector.broadcast %20 : vector<32x1xf32> to vector<32x32xf32>
    %22 = arith.mulf %12, %21 : vector<32x32xf32>
    %23 = vector.extract_strided_slice %3 {offsets = [1, 0], sizes = [1, 32], strides = [1, 1]} : vector<3x32xf32> to vector<1x32xf32>
    %24 = vector.broadcast %23 : vector<1x32xf32> to vector<32x32xf32>
    %25 = arith.mulf %22, %24 : vector<32x32xf32>
    %26 = vector.extract_strided_slice %3 {offsets = [2, 0], sizes = [1, 32], strides = [1, 1]} : vector<3x32xf32> to vector<1x32xf32>
    %27 = vector.broadcast %26 : vector<1x32xf32> to vector<32x32xf32>
    %28 = arith.addf %25, %27 : vector<32x32xf32>
    %c0_10 = arith.constant 0 : index
    %c0_11 = arith.constant 0 : index
    %29 = vector.load %arg4[%c0_10, %c0_11] : memref<32x32xf32, #tpu.memory_space<vmem>>, vector<32x32xf32>
    tpu.vector_store %arg4[%c0_10, %c0_11], %28 {strides = array<i32>} : memref<32x32xf32, #tpu.memory_space<vmem>>, vector<32x32xf32>,
    return
  }
  func.func @transform_0(%arg0: i32) -> (i32, i32) {
    %c0_i32 = arith.constant 0 : i32
    %c0_i32_0 = arith.constant 0 : i32
    return %arg0, %c0_i32 : i32, i32
  }
  func.func @transform_1(%arg0: i32) -> (i32, i32) {
    %c0_i32 = arith.constant 0 : i32
    %c0_i32_0 = arith.constant 0 : i32
    %c0_i32_1 = arith.constant 0 : i32
    return %c0_i32, %c0_i32_0 : i32, i32
  }
  func.func @transform_2(%arg0: i32) -> (i32, i32) {
    %c0_i32 = arith.constant 0 : i32
    %c0_i32_0 = arith.constant 0 : i32
    %c0_i32_1 = arith.constant 0 : i32
    return %c0_i32, %c0_i32_0 : i32, i32
  }
  func.func @transform_3(%arg0: i32) -> (i32, i32) {
    %c0_i32 = arith.constant 0 : i32
    %c0_i32_0 = arith.constant 0 : i32
    return %arg0, %c0_i32 : i32, i32
  }
}

module attributes {stable_mosaic.version = 11 : i64} {
  func.func @_patch_embed_kernel(%arg0: i32, %arg1: memref<32x128xf32, #tpu.memory_space<vmem>>, %arg2: memref<128x32xf32, #tpu.memory_space<vmem>>, %arg3: memref<3x32xf32, #tpu.memory_space<vmem>>, %arg4: memref<32x32xf32, #tpu.memory_space<vmem>>) attributes {dimension_semantics = [#tpu.dimension_semantics<parallel>], iteration_bounds = array<i64: 1>, scalar_prefetch = 0 : i64, scratch_operands = 0 : i64, tpu.core_type = #tpu.core_type<tc>, window_params = [{transform_indices = @transform_0, window_bounds = array<i64: 32, 128>}, {pipeline_mode = #tpu.pipeline_mode<synchronous>, transform_indices = @transform_1, window_bounds = array<i64: 128, 32>}, {pipeline_mode = #tpu.pipeline_mode<synchronous>, transform_indices = @transform_2, window_bounds = array<i64: 3, 32>}, {transform_indices = @transform_3, window_bounds = array<i64: 32, 32>}]} {
    %c0 = arith.constant 0 : index
    %c0_0 = arith.constant 0 : index
    %0 = vector.load %arg1[%c0, %c0_0] : memref<32x128xf32, #tpu.memory_space<vmem>>, vector<32x128xf32>
    %c0_1 = arith.constant 0 : index
    %c0_2 = arith.constant 0 : index
    %1 = vector.load %arg2[%c0_1, %c0_2] : memref<128x32xf32, #tpu.memory_space<vmem>>, vector<128x32xf32>
    %cst = arith.constant dense<0.000000e+00> : vector<32x32xf32>
    %2 = tpu.matmul %0, %1, %cst {dimension_numbers = #tpu.dot_dimension_numbers<[1], [0], [0], [1], [0, 0, 1, 1], [], []>} : vector<32x128xf32>, vector<128x32xf32>, vector<32x32xf32> -> vector<32x32xf32>
    %c0_3 = arith.constant 0 : index
    %c0_4 = arith.constant 0 : index
    %3 = vector.load %arg3[%c0_3, %c0_4] : memref<3x32xf32, #tpu.memory_space<vmem>>, vector<3x32xf32>
    %4 = vector.extract_strided_slice %3 {offsets = [0, 0], sizes = [1, 32], strides = [1, 1]} : vector<3x32xf32> to vector<1x32xf32>
    %5 = vector.broadcast %4 : vector<1x32xf32> to vector<32x32xf32>
    %6 = arith.addf %2, %5 : vector<32x32xf32>
    %cst_5 = arith.constant dense<0.000000e+00> : vector<32xf32>
    %7 = vector.multi_reduction <add>, %6, %cst_5 [1] : vector<32x32xf32> to vector<32xf32>
    %8 = vector.shape_cast %7 : vector<32xf32> to vector<32x1xf32>
    %cst_6 = arith.constant 3.125000e-02 : f32
    %9 = vector.broadcast %cst_6 : f32 to vector<32x1xf32>
    %10 = arith.mulf %8, %9 : vector<32x1xf32>
    %11 = vector.broadcast %10 : vector<32x1xf32> to vector<32x32xf32>
    %12 = arith.subf %6, %11 : vector<32x32xf32>
    %13 = arith.mulf %12, %12 : vector<32x32xf32>
    %cst_7 = arith.constant dense<0.000000e+00> : vector<32xf32>
    %14 = vector.multi_reduction <add>, %13, %cst_7 [1] : vector<32x32xf32> to vector<32xf32>
    %15 = vector.shape_cast %14 : vector<32xf32> to vector<32x1xf32>
    %cst_8 = arith.constant 3.125000e-02 : f32
    %16 = vector.broadcast %cst_8 : f32 to vector<32x1xf32>
    %17 = arith.mulf %15, %16 : vector<32x1xf32>
    %cst_9 = arith.constant 9.99999974E-6 : f32
    %18 = vector.broadcast %cst_9 : f32 to vector<32x1xf32>
    %19 = arith.addf %17, %18 : vector<32x1xf32>
    %20 = math.rsqrt %19 : vector<32x1xf32>
    %21 = vector.broadcast %20 : vector<32x1xf32> to vector<32x32xf32>
    %22 = arith.mulf %12, %21 : vector<32x32xf32>
    %23 = vector.extract_strided_slice %3 {offsets = [1, 0], sizes = [1, 32], strides = [1, 1]} : vector<3x32xf32> to vector<1x32xf32>
    %24 = vector.broadcast %23 : vector<1x32xf32> to vector<32x32xf32>
    %25 = arith.mulf %22, %24 : vector<32x32xf32>
    %26 = vector.extract_strided_slice %3 {offsets = [2, 0], sizes = [1, 32], strides = [1, 1]} : vector<3x32xf32> to vector<1x32xf32>
    %27 = vector.broadcast %26 : vector<1x32xf32> to vector<32x32xf32>
    %28 = arith.addf %25, %27 : vector<32x32xf32>
    %c0_10 = arith.constant 0 : index
    %c0_11 = arith.constant 0 : index
    %29 = vector.load %arg4[%c0_10, %c0_11] : memref<32x32xf32, #tpu.memory_space<vmem>>, vector<32x32xf32>
    tpu.vector_store %arg4[%c0_10, %c0_11], %28 {strides = array<i32>} : memref<32x32xf32, #tpu.memory_space<vmem>>, vector<32x32xf32>,
    return
  }
  func.func @transform_0(%arg0: i32) -> (i32, i32) {
    %c0_i32 = arith.constant 0 : i32
    %c0_i32_0 = arith.constant 0 : i32
    return %arg0, %c0_i32 : i32, i32
  }
  func.func @transform_1(%arg0: i32) -> (i32, i32) {
    %c0_i32 = arith.constant 0 : i32
    %c0_i32_0 = arith.constant 0 : i32
    %c0_i32_1 = arith.constant 0 : i32
    return %c0_i32, %c0_i32_0 : i32, i32
  }
  func.func @transform_2(%arg0: i32) -> (i32, i32) {
    %c0_i32 = arith.constant 0 : i32
    %c0_i32_0 = arith.constant 0 : i32
    %c0_i32_1 = arith.constant 0 : i32
    return %c0_i32, %c0_i32_0 : i32, i32
  }
  func.func @transform_3(%arg0: i32) -> (i32, i32) {
    %c0_i32 = arith.constant 0 : i32
    %c0_i32_0 = arith.constant 0 : i32
    return %arg0, %c0_i32 : i32, i32
  }
}

</mosaic_0001>

<bundles_post_ra>
// kernel: tpu_custom_call.1
= control target key start
LH: loop header
LB: loop body
LE: loop exit
PB: predicated region body
PF: predicated region fallthrough
CT: control target
= control target key end

     0   :  { %s393_s0 = inlined_call_operand.vmem [shape: f32[32,128], index: 0, kind: input, shape index: {}]   ;;  %s394_s1 = inlined_call_operand.vmem [shape: f32[128,32], index: 1, kind: input, shape index: {}]   ;;  %s395_s2 = inlined_call_operand.vmem [shape: f32[3,32], index: 2, kind: input, shape index: {}]   ;;  %s396_s3 = inlined_call_operand.hbm [shape: f32[32,32], index: 3, kind: output, shape index: {}]  }
   0x1   :  { %v34_v0 = vld [vmem:[%s394_s1 + $0x78] sm:$0xff]  ;;  %v33_v1 = vld [vmem:[%s394_s1 + $0x70] sm:$0xff]  ;;  %v32_v2 = vld [vmem:[%s394_s1 + $0x68] sm:$0xff] }
   0x2   :  { %37 = vmatpush.msra.mxu0 %v34_v0  ;;  %188 = vmatpush.msra.mxu2 %v34_v0  ;;  %v31_v3 = vld [vmem:[%s394_s1 + $0x60] sm:$0xff]  ;;  %v30_v4 = vld [vmem:[%s394_s1 + $0x58] sm:$0xff] }
   0x3   :  { %187 = vmatpush.msra.mxu1 %v34_v0  ;;  %189 = vmatpush.msra.mxu3 %v34_v0 }
   0x4   :  { %38 = vmatpush.msra.mxu0 %v33_v1  ;;  %191 = vmatpush.msra.mxu2 %v33_v1 }
   0x5   :  { %190 = vmatpush.msra.mxu1 %v33_v1  ;;  %192 = vmatpush.msra.mxu3 %v33_v1 }
   0x6   :  { %39 = vmatpush.msra.mxu0 %v32_v2  ;;  %194 = vmatpush.msra.mxu2 %v32_v2 }
   0x7   :  { %193 = vmatpush.msra.mxu1 %v32_v2  ;;  %195 = vmatpush.msra.mxu3 %v32_v2 }
   0x8   :  { %40 = vmatpush.msra.mxu0 %v31_v3  ;;  %197 = vmatpush.msra.mxu2 %v31_v3 }
   0x9   :  { %8 = vsyncpa [#allocation3], 0  ;;  %v29_v5 = vld [vmem:[%s394_s1 + $0x50] sm:$0xff]  ;;  %196 = vmatpush.msra.mxu1 %v31_v3  ;;  %198 = vmatpush.msra.mxu3 %v31_v3  ;;  %v28_v6 = vld [vmem:[%s394_s1 + $0x48] sm:$0xff]  ;;  %vm66_vm0 = vcmask 261120   ;;  %s175_s28 = sshll.u32 %s396_s3, 4  ;;  %s176_s28 = int_to_ptr.hbm [resolvable:$true] %s175_s28 }
   0xa   :  { %41 = vmatpush.msra.mxu0 %v30_v4  ;;  %200 = vmatpush.msra.mxu2 %v30_v4  ;;  %v27_v7 = vld [vmem:[%s394_s1 + $0x40] sm:$0xff]  ;;  %v26_v8 = vld [vmem:[%s394_s1 + $0x38] sm:$0xff]  ;;  %v25_v9 = vld [vmem:[%s394_s1 + $0x30] sm:$0xff]  ;;  %s273_s29 = smov 128   ;;  %s274_s30 = smov 8  }
   0xb   :  { %199 = vmatpush.msra.mxu1 %v30_v4  ;;  %201 = vmatpush.msra.mxu3 %v30_v4  ;;  %v24_v10 = vld [vmem:[%s394_s1 + $0x28] sm:$0xff]  ;;  %v23_v11 = vld [vmem:[%s394_s1 + $0x20] sm:$0xff]  ;;  %v22_v12 = vld [vmem:[%s394_s1 + $0x18] sm:$0xff] }
   0xc   :  { %42 = vmatpush.msra.mxu0 %v29_v5  ;;  %203 = vmatpush.msra.mxu2 %v29_v5  ;;  %v21_v13 = vld [vmem:[%s394_s1 + $0x10] sm:$0xff]  ;;  %v20_v14 = vld [vmem:[%s394_s1 + $0x8] sm:$0xff]  ;;  %v19_v15 = vld [vmem:[%s394_s1] sm:$0xff] }
   0xd   :  { %202 = vmatpush.msra.mxu1 %v29_v5  ;;  %204 = vmatpush.msra.mxu3 %v29_v5  ;;  %v15_v16 = vld [vmem:[%s393_s0] sm:$0xff]  ;;  %v17_v17 = vld [vmem:[%s393_s0 + $0x10] sm:$0xff]  ;;  %v16_v18 = vld [vmem:[%s393_s0 + $0x8] sm:$0xff] }
   0xe   :  { %43 = vmatpush.msra.mxu0 %v28_v6  ;;  %206 = vmatpush.msra.mxu2 %v28_v6  ;;  %v18_v19 = vld [vmem:[%s393_s0 + $0x18] sm:$0xff]  ;;  %v358_v20 = vld [vmem:[%s395_s2] sm:$0x7]  ;;  %s272_s0 = smov [#allocation2]  }
   0xf   :  { %205 = vmatpush.msra.mxu1 %v28_v6  ;;  %207 = vmatpush.msra.mxu3 %v28_v6  ;;  %v36_v21 = vperm.slane %v358_v20, 0  ;;  %s173_s2 = sshll.u32 %s272_s0, 4  ;;  %s174_s2 = int_to_ptr.vmem [resolvable:$true] %s173_s2 }
  0x10   :  { %44 = vmatpush.msra.mxu0 %v27_v7  ;;  %209 = vmatpush.msra.mxu2 %v27_v7 }
  0x11   :  { %208 = vmatpush.msra.mxu1 %v27_v7  ;;  %210 = vmatpush.msra.mxu3 %v27_v7 }
  0x12   :  { %45 = vmatpush.msra.mxu0 %v26_v8  ;;  %212 = vmatpush.msra.mxu2 %v26_v8 }
  0x13   :  { %211 = vmatpush.msra.mxu1 %v26_v8  ;;  %213 = vmatpush.msra.mxu3 %v26_v8 }
  0x14   :  { %46 = vmatpush.msra.mxu0 %v25_v9  ;;  %215 = vmatpush.msra.mxu2 %v25_v9 }
  0x15   :  { %214 = vmatpush.msra.mxu1 %v25_v9  ;;  %216 = vmatpush.msra.mxu3 %v25_v9 }
  0x16   :  { %47 = vmatpush.msra.mxu0 %v24_v10  ;;  %218 = vmatpush.msra.mxu2 %v24_v10 }
  0x17   :  { %217 = vmatpush.msra.mxu1 %v24_v10  ;;  %219 = vmatpush.msra.mxu3 %v24_v10 }
  0x18   :  { %48 = vmatpush.msra.mxu0 %v23_v11  ;;  %221 = vmatpush.msra.mxu2 %v23_v11 }
  0x19   :  { %220 = vmatpush.msra.mxu1 %v23_v11  ;;  %222 = vmatpush.msra.mxu3 %v23_v11 }
  0x1a   :  { %49 = vmatpush.msra.mxu0 %v22_v12  ;;  %224 = vmatpush.msra.mxu2 %v22_v12 }
  0x1b   :  { %223 = vmatpush.msra.mxu1 %v22_v12  ;;  %225 = vmatpush.msra.mxu3 %v22_v12 }
  0x1c   :  { %50 = vmatpush.msra.mxu0 %v21_v13  ;;  %227 = vmatpush.msra.mxu2 %v21_v13 }
  0x1d   :  { %226 = vmatpush.msra.mxu1 %v21_v13  ;;  %228 = vmatpush.msra.mxu3 %v21_v13  ;;  %v155_v13 = vperm.slane %v358_v20, 1 }
  0x1e   :  { %51 = vmatpush.msra.mxu0 %v20_v14  ;;  %230 = vmatpush.msra.mxu2 %v20_v14 }
  0x1f   :  { %229 = vmatpush.msra.mxu1 %v20_v14  ;;  %231 = vmatpush.msra.mxu3 %v20_v14 }
  0x20   :  { %52 = vmatpush.msra.mxu0 %v19_v15  ;;  %233 = vmatpush.msra.mxu2 %v19_v15 }
  0x21   :  { %53 = vmatmul.f32.vlgmr.msra.gmra.mxu0 %v15_v16  ;;  %59 = vmatmul.f32.vlgmr.msra.gmra.mxu2 %v17_v17  ;;  %v160_v17 = vperm.slane %v358_v20, 2 }
  0x22   :  { %232 = vmatpush.msra.mxu1 %v19_v15  ;;  %234 = vmatpush.msra.mxu3 %v19_v15 }
  0x23   :  { %56 = vmatmul.f32.vlgmr.msra.gmra.mxu1 %v16_v18  ;;  %62 = vmatmul.f32.vlgmr.msra.gmra.mxu3 %v18_v19 }
  0x9e   :  { %v54_v22 = vpop.f32.mrf.mxu0 }
  0x9f   :  { %v55_v23 = vadd.f32 %v54_v22, %v36_v21 }
  0xa0   :  { %v57_v24 = vpop.f32.mrf.mxu1 }
  0xa1   :  { %v67_v25 = vsel %vm66_vm0, %v55_v23, 0.0  ;;  %v58_v26 = vadd.f32 %v57_v24, %v36_v21 }
  0xa2   :  { %68 = vadd.xlane.f32.xlu0 %v67_v25 }
  0xa3   :  { %v70_v31 = vsel %vm66_vm0, %v58_v26, 0.0 }
  0xa4   :  { %v60_v27 = vpop.f32.mrf.mxu2 }
  0xa5   :  { %v61_v28 = vadd.f32 %v60_v27, %v36_v21 }
  0xa6   :  { %v63_v29 = vpop.f32.mrf.mxu3 }
  0xa7   :  { %v73_v30 = vsel %vm66_vm0, %v61_v28, 0.0  ;;  %v64_v32 = vadd.f32 %v63_v29, %v36_v21 }
  0xa8   :  { %74 = vadd.xlane.f32.xlu1 %v73_v30 }
  0xa9   :  { %v76_v33 = vsel %vm66_vm0, %v64_v32, 0.0 }
  0xaa   :  { %71 = vadd.xlane.f32.xlu0 %v70_v31 }
  0xb0   :  { %77 = vadd.xlane.f32.xlu1 %v76_v33 }
 0x115   :  { %v69_v34 = vpop.xlane.xlu0 %68 }
 0x116   :  { %v79_v35 = vmul.f32 0.03125, %v69_v34 }
 0x118   :  { %v83_v36 = vsub.f32 %v55_v23, %v79_v35 }
 0x11a   :  { %v87_v37 = vmul.f32 %v83_v36, %v83_v36 }
 0x11b   :  { %v75_v38 = vpop.xlane.xlu1 %74 }
 0x11c   :  { %v81_v39 = vmul.f32 0.03125, %v75_v38  ;;  %v91_v40 = vsel %vm66_vm0, %v87_v37, 0.0 }
 0x11d   :  { %92 = vadd.xlane.f32.xlu2 %v91_v40  ;;  %v72_v41 = vpop.xlane.xlu0 %71 }
 0x11e   :  { %v366_v42 = vsub.f32 %v61_v28, %v81_v39  ;;  %v80_v43 = vmul.f32 0.03125, %v72_v41 }
 0x120   :  { %v368_v44 = vsub.f32 %v58_v26, %v80_v43  ;;  %v89_v45 = vmul.f32 %v366_v42, %v366_v42 }
 0x122   :  { %v97_v46 = vsel %vm66_vm0, %v89_v45, 0.0  ;;  %v88_v47 = vmul.f32 %v368_v44, %v368_v44 }
 0x123   :  { %v78_v48 = vpop.xlane.xlu1 %77  ;;  %98 = vadd.xlane.f32.xlu0 %v97_v46 }
 0x124   :  { %v82_v49 = vmul.f32 0.03125, %v78_v48  ;;  %v94_v50 = vsel %vm66_vm0, %v88_v47, 0.0 }
 0x125   :  { %95 = vadd.xlane.f32.xlu2 %v94_v50 }
 0x126   :  { %v376_v51 = vsub.f32 %v64_v32, %v82_v49 }
 0x128   :  { %v90_v52 = vmul.f32 %v376_v51, %v376_v51 }
 0x12a   :  { %v100_v53 = vsel %vm66_vm0, %v90_v52, 0.0 }
 0x12b   :  { %101 = vadd.xlane.f32.xlu1 %v100_v53 }
 0x190   :  { %v93_v54 = vpop.xlane.xlu2 %92 }
 0x191   :  { %v103_v55 = vmul.f32 0.03125, %v93_v54 }
 0x193   :  { %v107_v56 = vadd.f32 1e-05, %v103_v55 }
 0x195   :  { %238 = vrsqrt.f32 %v107_v56  ;;  %vm117_vm2 = vweird.f32 %v107_v56 }
 0x196   :  { %v99_v57 = vpop.xlane.xlu0 %98 }
 0x197   :  { %v105_v58 = vmul.f32 0.03125, %v99_v57 }
 0x198   :  { %v96_v59 = vpop.xlane.xlu2 %95 }
 0x199   :  { %v109_v60 = vadd.f32 1e-05, %v105_v58  ;;  %v104_v61 = vmul.f32 0.03125, %v96_v59 }
 0x19b   :  { %v239_v62 = vpop.eup %238  ;;  %240 = vrsqrt.f32 %v109_v60  ;;  %v108_v63 = vadd.f32 1e-05, %v104_v61  ;;  %vm137_vm5 = vweird.f32 %v109_v60 }
 0x19c   :  { %v112_v0 = vmul.f32 %v239_v62, %v107_v56  ;;  %vm118_vm1 = vweird.f32 %v239_v62 }
 0x19d   :  { %242 = vrsqrt.f32 %v108_v63  ;;  %vm119_vm3 = vmor %vm117_vm2, %vm118_vm1  ;;  %vm127_vm8 = vweird.f32 %v108_v63 }
 0x19e   :  { %v113_v1 = vmul.f32 %v239_v62, %v112_v0  ;;  %v102_v2 = vpop.xlane.xlu1 %101 }
 0x19f   :  { %v106_v3 = vmul.f32 0.03125, %v102_v2 }
 0x1a0   :  { %v114_v4 = vmul.f32 0.5, %v113_v1 }
 0x1a1   :  { %v241_v5 = vpop.eup %240  ;;  %v110_v6 = vadd.f32 1e-05, %v106_v3 }
 0x1a2   :  { %v115_v7 = vsub.f32 1.5, %v114_v4  ;;  %v132_v8 = vmul.f32 %v241_v5, %v109_v60  ;;  %vm138_vm4 = vweird.f32 %v241_v5 }
 0x1a3   :  { %v243_v9 = vpop.eup %242  ;;  %244 = vrsqrt.f32 %v110_v6  ;;  %vm139_vm7 = vmor %vm137_vm5, %vm138_vm4  ;;  %vm147_vm11 = vweird.f32 %v110_v6 }
 0x1a4   :  { %v116_v10 = vmul.f32 %v239_v62, %v115_v7  ;;  %v133_v11 = vmul.f32 %v241_v5, %v132_v8  ;;  %v122_v12 = vmul.f32 %v243_v9, %v108_v63  ;;  %vm128_vm6 = vweird.f32 %v243_v9 }
 0x1a5   :  { %vm129_vm9 = vmor %vm127_vm8, %vm128_vm6 }
 0x1a6   :  { %v120_v14 = vsel %vm119_vm3, %v239_v62, %v116_v10  ;;  %v134_v15 = vmul.f32 0.5, %v133_v11  ;;  %v123_v16 = vmul.f32 %v243_v9, %v122_v12 }
 0x1a7   :  { %v151_v18 = vmul.f32 %v120_v14, %v83_v36 }
 0x1a8   :  { %v135_v19 = vsub.f32 1.5, %v134_v15  ;;  %v124_v21 = vmul.f32 0.5, %v123_v16 }
 0x1a9   :  { %v245_v22 = vpop.eup %244  ;;  %v156_v23 = vmul.f32 %v155_v13, %v151_v18 }
 0x1aa   :  { %v136_v24 = vmul.f32 %v241_v5, %v135_v19  ;;  %v125_v25 = vsub.f32 1.5, %v124_v21  ;;  %v142_v26 = vmul.f32 %v245_v22, %v110_v6  ;;  %vm148_vm10 = vweird.f32 %v245_v22 }
 0x1ab   :  { %v161_v27 = vadd.f32 %v160_v17, %v156_v23  ;;  %vm149_vm12 = vmor %vm147_vm11, %vm148_vm10 }
 0x1ac   :  { %v140_v28 = vsel %vm139_vm7, %v241_v5, %v136_v24  ;;  %v126_v29 = vmul.f32 %v243_v9, %v125_v25  ;;  %v143_v30 = vmul.f32 %v245_v22, %v142_v26 }
 0x1ad   :  { %165 = vst.msk [vmem:[#allocation2] sm:$0xff] %vm66_vm0, %v161_v27  ;;  %v153_v20 = vmul.f32 %v140_v28, %v366_v42 }
 0x1ae   :  { %v130_v31 = vsel %vm129_vm9, %v243_v9, %v126_v29  ;;  %v144_v32 = vmul.f32 0.5, %v143_v30 }
 0x1af   :  { %v158_v33 = vmul.f32 %v155_v13, %v153_v20  ;;  %v152_v34 = vmul.f32 %v130_v31, %v368_v44 }
 0x1b0   :  { %v145_v35 = vsub.f32 1.5, %v144_v32 }
 0x1b1   :  { %v163_v36 = vadd.f32 %v160_v17, %v158_v33  ;;  %v157_v37 = vmul.f32 %v155_v13, %v152_v34 }
 0x1b2   :  { %v146_v38 = vmul.f32 %v245_v22, %v145_v35 }
 0x1b3   :  { %167 = vst.msk [vmem:[#allocation2 + $0x10] sm:$0xff] %vm66_vm0, %v163_v36  ;;  %v162_v39 = vadd.f32 %v160_v17, %v157_v37 }
 0x1b4   :  { %v150_v40 = vsel %vm149_vm12, %v245_v22, %v146_v38 }
 0x1b5   :  { %166 = vst.msk [vmem:[#allocation2 + $0x8] sm:$0xff] %vm66_vm0, %v162_v39  ;;  %v154_v41 = vmul.f32 %v150_v40, %v376_v51 }
 0x1b7   :  { %v159_v42 = vmul.f32 %v155_v13, %v154_v41 }
 0x1b9   :  { %v164_v43 = vadd.f32 %v160_v17, %v159_v42 }
 0x1bb   :  { %168 = vst.msk [vmem:[#allocation2 + $0x18] sm:$0xff] %vm66_vm0, %v164_v43 }
 0x1bc   :  { %181 = dma.vmem_to_hbm [thread:$0]  %s174_s2, 512, %s176_s28, [#allocation3], %s273_s29, %s273_s29, %s274_s30  }
 0x1bd   :  { %270 = dma.done.wait [#allocation3], 512  }
 0x1be   :  { %271 = vsyncadd [#allocation3], 4294966784 }
 0x1bf   :  { %186 = vsyncpa [#allocation3], 1 }

// kernel: tpu_custom_call.1
= control target key start
LH: loop header
LB: loop body
LE: loop exit
PB: predicated region body
PF: predicated region fallthrough
CT: control target
= control target key end

     0   :  { %s393_s0 = inlined_call_operand.vmem [shape: f32[32,128], index: 0, kind: input, shape index: {}]   ;;  %s394_s1 = inlined_call_operand.vmem [shape: f32[128,32], index: 1, kind: input, shape index: {}]   ;;  %s395_s2 = inlined_call_operand.vmem [shape: f32[3,32], index: 2, kind: input, shape index: {}]   ;;  %s396_s3 = inlined_call_operand.hbm [shape: f32[32,32], index: 3, kind: output, shape index: {}]  }
   0x1   :  { %v34_v0 = vld [vmem:[%s394_s1 + $0x78] sm:$0xff]  ;;  %v33_v1 = vld [vmem:[%s394_s1 + $0x70] sm:$0xff]  ;;  %v32_v2 = vld [vmem:[%s394_s1 + $0x68] sm:$0xff] }
   0x2   :  { %37 = vmatpush.msra.mxu0 %v34_v0  ;;  %188 = vmatpush.msra.mxu2 %v34_v0  ;;  %v31_v3 = vld [vmem:[%s394_s1 + $0x60] sm:$0xff]  ;;  %v30_v4 = vld [vmem:[%s394_s1 + $0x58] sm:$0xff] }
   0x3   :  { %187 = vmatpush.msra.mxu1 %v34_v0  ;;  %189 = vmatpush.msra.mxu3 %v34_v0 }
   0x4   :  { %38 = vmatpush.msra.mxu0 %v33_v1  ;;  %191 = vmatpush.msra.mxu2 %v33_v1 }
   0x5   :  { %190 = vmatpush.msra.mxu1 %v33_v1  ;;  %192 = vmatpush.msra.mxu3 %v33_v1 }
   0x6   :  { %39 = vmatpush.msra.mxu0 %v32_v2  ;;  %194 = vmatpush.msra.mxu2 %v32_v2 }
   0x7   :  { %193 = vmatpush.msra.mxu1 %v32_v2  ;;  %195 = vmatpush.msra.mxu3 %v32_v2 }
   0x8   :  { %40 = vmatpush.msra.mxu0 %v31_v3  ;;  %197 = vmatpush.msra.mxu2 %v31_v3 }
   0x9   :  { %8 = vsyncpa [#allocation3], 0  ;;  %v29_v5 = vld [vmem:[%s394_s1 + $0x50] sm:$0xff]  ;;  %196 = vmatpush.msra.mxu1 %v31_v3  ;;  %198 = vmatpush.msra.mxu3 %v31_v3  ;;  %v28_v6 = vld [vmem:[%s394_s1 + $0x48] sm:$0xff]  ;;  %vm66_vm0 = vcmask 261120   ;;  %s175_s28 = sshll.u32 %s396_s3, 4  ;;  %s176_s28 = int_to_ptr.hbm [resolvable:$true] %s175_s28 }
   0xa   :  { %41 = vmatpush.msra.mxu0 %v30_v4  ;;  %200 = vmatpush.msra.mxu2 %v30_v4  ;;  %v27_v7 = vld [vmem:[%s394_s1 + $0x40] sm:$0xff]  ;;  %v26_v8 = vld [vmem:[%s394_s1 + $0x38] sm:$0xff]  ;;  %v25_v9 = vld [vmem:[%s394_s1 + $0x30] sm:$0xff]  ;;  %s273_s29 = smov 128   ;;  %s274_s30 = smov 8  }
   0xb   :  { %199 = vmatpush.msra.mxu1 %v30_v4  ;;  %201 = vmatpush.msra.mxu3 %v30_v4  ;;  %v24_v10 = vld [vmem:[%s394_s1 + $0x28] sm:$0xff]  ;;  %v23_v11 = vld [vmem:[%s394_s1 + $0x20] sm:$0xff]  ;;  %v22_v12 = vld [vmem:[%s394_s1 + $0x18] sm:$0xff] }
   0xc   :  { %42 = vmatpush.msra.mxu0 %v29_v5  ;;  %203 = vmatpush.msra.mxu2 %v29_v5  ;;  %v21_v13 = vld [vmem:[%s394_s1 + $0x10] sm:$0xff]  ;;  %v20_v14 = vld [vmem:[%s394_s1 + $0x8] sm:$0xff]  ;;  %v19_v15 = vld [vmem:[%s394_s1] sm:$0xff] }
   0xd   :  { %202 = vmatpush.msra.mxu1 %v29_v5  ;;  %204 = vmatpush.msra.mxu3 %v29_v5  ;;  %v15_v16 = vld [vmem:[%s393_s0] sm:$0xff]  ;;  %v17_v17 = vld [vmem:[%s393_s0 + $0x10] sm:$0xff]  ;;  %v16_v18 = vld [vmem:[%s393_s0 + $0x8] sm:$0xff] }
   0xe   :  { %43 = vmatpush.msra.mxu0 %v28_v6  ;;  %206 = vmatpush.msra.mxu2 %v28_v6  ;;  %v18_v19 = vld [vmem:[%s393_s0 + $0x18] sm:$0xff]  ;;  %v358_v20 = vld [vmem:[%s395_s2] sm:$0x7]  ;;  %s272_s0 = smov [#allocation2]  }
   0xf   :  { %205 = vmatpush.msra.mxu1 %v28_v6  ;;  %207 = vmatpush.msra.mxu3 %v28_v6  ;;  %v36_v21 = vperm.slane %v358_v20, 0  ;;  %s173_s2 = sshll.u32 %s272_s0, 4  ;;  %s174_s2 = int_to_ptr.vmem [resolvable:$true] %s173_s2 }
  0x10   :  { %44 = vmatpush.msra.mxu0 %v27_v7  ;;  %209 = vmatpush.msra.mxu2 %v27_v7 }
  0x11   :  { %208 = vmatpush.msra.mxu1 %v27_v7  ;;  %210 = vmatpush.msra.mxu3 %v27_v7 }
  0x12   :  { %45 = vmatpush.msra.mxu0 %v26_v8  ;;  %212 = vmatpush.msra.mxu2 %v26_v8 }
  0x13   :  { %211 = vmatpush.msra.mxu1 %v26_v8  ;;  %213 = vmatpush.msra.mxu3 %v26_v8 }
  0x14   :  { %46 = vmatpush.msra.mxu0 %v25_v9  ;;  %215 = vmatpush.msra.mxu2 %v25_v9 }
  0x15   :  { %214 = vmatpush.msra.mxu1 %v25_v9  ;;  %216 = vmatpush.msra.mxu3 %v25_v9 }
  0x16   :  { %47 = vmatpush.msra.mxu0 %v24_v10  ;;  %218 = vmatpush.msra.mxu2 %v24_v10 }
  0x17   :  { %217 = vmatpush.msra.mxu1 %v24_v10  ;;  %219 = vmatpush.msra.mxu3 %v24_v10 }
  0x18   :  { %48 = vmatpush.msra.mxu0 %v23_v11  ;;  %221 = vmatpush.msra.mxu2 %v23_v11 }
  0x19   :  { %220 = vmatpush.msra.mxu1 %v23_v11  ;;  %222 = vmatpush.msra.mxu3 %v23_v11 }
  0x1a   :  { %49 = vmatpush.msra.mxu0 %v22_v12  ;;  %224 = vmatpush.msra.mxu2 %v22_v12 }
  0x1b   :  { %223 = vmatpush.msra.mxu1 %v22_v12  ;;  %225 = vmatpush.msra.mxu3 %v22_v12 }
  0x1c   :  { %50 = vmatpush.msra.mxu0 %v21_v13  ;;  %227 = vmatpush.msra.mxu2 %v21_v13 }
  0x1d   :  { %226 = vmatpush.msra.mxu1 %v21_v13  ;;  %228 = vmatpush.msra.mxu3 %v21_v13  ;;  %v155_v13 = vperm.slane %v358_v20, 1 }
  0x1e   :  { %51 = vmatpush.msra.mxu0 %v20_v14  ;;  %230 = vmatpush.msra.mxu2 %v20_v14 }
  0x1f   :  { %229 = vmatpush.msra.mxu1 %v20_v14  ;;  %231 = vmatpush.msra.mxu3 %v20_v14 }
  0x20   :  { %52 = vmatpush.msra.mxu0 %v19_v15  ;;  %233 = vmatpush.msra.mxu2 %v19_v15 }
  0x21   :  { %53 = vmatmul.f32.vlgmr.msra.gmra.mxu0 %v15_v16  ;;  %59 = vmatmul.f32.vlgmr.msra.gmra.mxu2 %v17_v17  ;;  %v160_v17 = vperm.slane %v358_v20, 2 }
  0x22   :  { %232 = vmatpush.msra.mxu1 %v19_v15  ;;  %234 = vmatpush.msra.mxu3 %v19_v15 }
  0x23   :  { %56 = vmatmul.f32.vlgmr.msra.gmra.mxu1 %v16_v18  ;;  %62 = vmatmul.f32.vlgmr.msra.gmra.mxu3 %v18_v19 }
  0x9e   :  { %v54_v22 = vpop.f32.mrf.mxu0 }
  0x9f   :  { %v55_v23 = vadd.f32 %v54_v22, %v36_v21 }
  0xa0   :  { %v57_v24 = vpop.f32.mrf.mxu1 }
  0xa1   :  { %v67_v25 = vsel %vm66_vm0, %v55_v23, 0.0  ;;  %v58_v26 = vadd.f32 %v57_v24, %v36_v21 }
  0xa2   :  { %68 = vadd.xlane.f32.xlu0 %v67_v25 }
  0xa3   :  { %v70_v31 = vsel %vm66_vm0, %v58_v26, 0.0 }
  0xa4   :  { %v60_v27 = vpop.f32.mrf.mxu2 }
  0xa5   :  { %v61_v28 = vadd.f32 %v60_v27, %v36_v21 }
  0xa6   :  { %v63_v29 = vpop.f32.mrf.mxu3 }
  0xa7   :  { %v73_v30 = vsel %vm66_vm0, %v61_v28, 0.0  ;;  %v64_v32 = vadd.f32 %v63_v29, %v36_v21 }
  0xa8   :  { %74 = vadd.xlane.f32.xlu1 %v73_v30 }
  0xa9   :  { %v76_v33 = vsel %vm66_vm0, %v64_v32, 0.0 }
  0xaa   :  { %71 = vadd.xlane.f32.xlu0 %v70_v31 }
  0xb0   :  { %77 = vadd.xlane.f32.xlu1 %v76_v33 }
 0x115   :  { %v69_v34 = vpop.xlane.xlu0 %68 }
 0x116   :  { %v79_v35 = vmul.f32 0.03125, %v69_v34 }
 0x118   :  { %v83_v36 = vsub.f32 %v55_v23, %v79_v35 }
 0x11a   :  { %v87_v37 = vmul.f32 %v83_v36, %v83_v36 }
 0x11b   :  { %v75_v38 = vpop.xlane.xlu1 %74 }
 0x11c   :  { %v81_v39 = vmul.f32 0.03125, %v75_v38  ;;  %v91_v40 = vsel %vm66_vm0, %v87_v37, 0.0 }
 0x11d   :  { %92 = vadd.xlane.f32.xlu2 %v91_v40  ;;  %v72_v41 = vpop.xlane.xlu0 %71 }
 0x11e   :  { %v366_v42 = vsub.f32 %v61_v28, %v81_v39  ;;  %v80_v43 = vmul.f32 0.03125, %v72_v41 }
 0x120   :  { %v368_v44 = vsub.f32 %v58_v26, %v80_v43  ;;  %v89_v45 = vmul.f32 %v366_v42, %v366_v42 }
 0x122   :  { %v97_v46 = vsel %vm66_vm0, %v89_v45, 0.0  ;;  %v88_v47 = vmul.f32 %v368_v44, %v368_v44 }
 0x123   :  { %v78_v48 = vpop.xlane.xlu1 %77  ;;  %98 = vadd.xlane.f32.xlu0 %v97_v46 }
 0x124   :  { %v82_v49 = vmul.f32 0.03125, %v78_v48  ;;  %v94_v50 = vsel %vm66_vm0, %v88_v47, 0.0 }
 0x125   :  { %95 = vadd.xlane.f32.xlu2 %v94_v50 }
 0x126   :  { %v376_v51 = vsub.f32 %v64_v32, %v82_v49 }
 0x128   :  { %v90_v52 = vmul.f32 %v376_v51, %v376_v51 }
 0x12a   :  { %v100_v53 = vsel %vm66_vm0, %v90_v52, 0.0 }
 0x12b   :  { %101 = vadd.xlane.f32.xlu1 %v100_v53 }
 0x190   :  { %v93_v54 = vpop.xlane.xlu2 %92 }
 0x191   :  { %v103_v55 = vmul.f32 0.03125, %v93_v54 }
 0x193   :  { %v107_v56 = vadd.f32 1e-05, %v103_v55 }
 0x195   :  { %238 = vrsqrt.f32 %v107_v56  ;;  %vm117_vm2 = vweird.f32 %v107_v56 }
 0x196   :  { %v99_v57 = vpop.xlane.xlu0 %98 }
 0x197   :  { %v105_v58 = vmul.f32 0.03125, %v99_v57 }
 0x198   :  { %v96_v59 = vpop.xlane.xlu2 %95 }
 0x199   :  { %v109_v60 = vadd.f32 1e-05, %v105_v58  ;;  %v104_v61 = vmul.f32 0.03125, %v96_v59 }
 0x19b   :  { %v239_v62 = vpop.eup %238  ;;  %240 = vrsqrt.f32 %v109_v60  ;;  %v108_v63 = vadd.f32 1e-05, %v104_v61  ;;  %vm137_vm5 = vweird.f32 %v109_v60 }
 0x19c   :  { %v112_v0 = vmul.f32 %v239_v62, %v107_v56  ;;  %vm118_vm1 = vweird.f32 %v239_v62 }
 0x19d   :  { %242 = vrsqrt.f32 %v108_v63  ;;  %vm119_vm3 = vmor %vm117_vm2, %vm118_vm1  ;;  %vm127_vm8 = vweird.f32 %v108_v63 }
 0x19e   :  { %v113_v1 = vmul.f32 %v239_v62, %v112_v0  ;;  %v102_v2 = vpop.xlane.xlu1 %101 }
 0x19f   :  { %v106_v3 = vmul.f32 0.03125, %v102_v2 }
 0x1a0   :  { %v114_v4 = vmul.f32 0.5, %v113_v1 }
 0x1a1   :  { %v241_v5 = vpop.eup %240  ;;  %v110_v6 = vadd.f32 1e-05, %v106_v3 }
 0x1a2   :  { %v115_v7 = vsub.f32 1.5, %v114_v4  ;;  %v132_v8 = vmul.f32 %v241_v5, %v109_v60  ;;  %vm138_vm4 = vweird.f32 %v241_v5 }
 0x1a3   :  { %v243_v9 = vpop.eup %242  ;;  %244 = vrsqrt.f32 %v110_v6  ;;  %vm139_vm7 = vmor %vm137_vm5, %vm138_vm4  ;;  %vm147_vm11 = vweird.f32 %v110_v6 }
 0x1a4   :  { %v116_v10 = vmul.f32 %v239_v62, %v115_v7  ;;  %v133_v11 = vmul.f32 %v241_v5, %v132_v8  ;;  %v122_v12 = vmul.f32 %v243_v9, %v108_v63  ;;  %vm128_vm6 = vweird.f32 %v243_v9 }
 0x1a5   :  { %vm129_vm9 = vmor %vm127_vm8, %vm128_vm6 }
 0x1a6   :  { %v120_v14 = vsel %vm119_vm3, %v239_v62, %v116_v10  ;;  %v134_v15 = vmul.f32 0.5, %v133_v11  ;;  %v123_v16 = vmul.f32 %v243_v9, %v122_v12 }
 0x1a7   :  { %v151_v18 = vmul.f32 %v120_v14, %v83_v36 }
 0x1a8   :  { %v135_v19 = vsub.f32 1.5, %v134_v15  ;;  %v124_v21 = vmul.f32 0.5, %v123_v16 }
 0x1a9   :  { %v245_v22 = vpop.eup %244  ;;  %v156_v23 = vmul.f32 %v155_v13, %v151_v18 }
 0x1aa   :  { %v136_v24 = vmul.f32 %v241_v5, %v135_v19  ;;  %v125_v25 = vsub.f32 1.5, %v124_v21  ;;  %v142_v26 = vmul.f32 %v245_v22, %v110_v6  ;;  %vm148_vm10 = vweird.f32 %v245_v22 }
 0x1ab   :  { %v161_v27 = vadd.f32 %v160_v17, %v156_v23  ;;  %vm149_vm12 = vmor %vm147_vm11, %vm148_vm10 }
 0x1ac   :  { %v140_v28 = vsel %vm139_vm7, %v241_v5, %v136_v24  ;;  %v126_v29 = vmul.f32 %v243_v9, %v125_v25  ;;  %v143_v30 = vmul.f32 %v245_v22, %v142_v26 }
 0x1ad   :  { %165 = vst.msk [vmem:[#allocation2] sm:$0xff] %vm66_vm0, %v161_v27  ;;  %v153_v20 = vmul.f32 %v140_v28, %v366_v42 }
 0x1ae   :  { %v130_v31 = vsel %vm129_vm9, %v243_v9, %v126_v29  ;;  %v144_v32 = vmul.f32 0.5, %v143_v30 }
 0x1af   :  { %v158_v33 = vmul.f32 %v155_v13, %v153_v20  ;;  %v152_v34 = vmul.f32 %v130_v31, %v368_v44 }
 0x1b0   :  { %v145_v35 = vsub.f32 1.5, %v144_v32 }
 0x1b1   :  { %v163_v36 = vadd.f32 %v160_v17, %v158_v33  ;;  %v157_v37 = vmul.f32 %v155_v13, %v152_v34 }
 0x1b2   :  { %v146_v38 = vmul.f32 %v245_v22, %v145_v35 }
 0x1b3   :  { %167 = vst.msk [vmem:[#allocation2 + $0x10] sm:$0xff] %vm66_vm0, %v163_v36  ;;  %v162_v39 = vadd.f32 %v160_v17, %v157_v37 }
 0x1b4   :  { %v150_v40 = vsel %vm149_vm12, %v245_v22, %v146_v38 }
 0x1b5   :  { %166 = vst.msk [vmem:[#allocation2 + $0x8] sm:$0xff] %vm66_vm0, %v162_v39  ;;  %v154_v41 = vmul.f32 %v150_v40, %v376_v51 }
 0x1b7   :  { %v159_v42 = vmul.f32 %v155_v13, %v154_v41 }
 0x1b9   :  { %v164_v43 = vadd.f32 %v160_v17, %v159_v42 }
 0x1bb   :  { %168 = vst.msk [vmem:[#allocation2 + $0x18] sm:$0xff] %vm66_vm0, %v164_v43 }
 0x1bc   :  { %181 = dma.vmem_to_hbm [thread:$0]  %s174_s2, 512, %s176_s28, [#allocation3], %s273_s29, %s273_s29, %s274_s30  }
 0x1bd   :  { %270 = dma.done.wait [#allocation3], 512  }
 0x1be   :  { %271 = vsyncadd [#allocation3], 4294966784 }
 0x1bf   :  { %186 = vsyncpa [#allocation3], 1 }

</bundles_post_ra>
